<compile_context>
chip_gen: v7x
topology: tpu7x:2x2x1
jax: 0.10.0
libtpu: 0.0.40
codegen_flags: <defaults>
</compile_context>

<pallas_src>
import functools

import jax
import jax.numpy as jnp
from jax.experimental import pallas as pl
from jax.experimental.pallas import tpu as pltpu

ROW_TILE = 2048                 # rows per grid step (MXU/sublane friendly)
LANE = 128                      # feature dims zero-padded to multiples of 128
VMEM_LIMIT = 32 * 1024 * 1024   # fits v5e/v6e/v7x; > v5e 16 MiB default


def _ceil_to(x, m):
    return ((x + m - 1) // m) * m


def _pad2(a, rows, cols):
    r, c = a.shape
    return jnp.pad(a, ((0, rows - r), (0, cols - c)))


def _pad_lanes(a, cols):
    return jnp.pad(a, ((0, 0), (0, cols - a.shape[1])))


def _silu_bf16(h_f32):
    # SiLU with a single transcendental: sigmoid(x) = 0.5*tanh(x/2) + 0.5.
    # Computed in bf16 (result feeds a bf16 MXU matmul anyway; v6e/v7x EUP
    # runs bf16 at ~2x, v5e extends internally).
    hb = h_f32.astype(jnp.bfloat16)
    return hb * (0.5 * jnp.tanh(0.5 * hb) + 0.5)


# ---------------------------------------------------------------------------
# Fused 3-layer MLP (+ optional LayerNorm, + optional fused residual) kernel
# == build_mlp(drop_out=False, lay_norm=use_ln, 'SiLU') [+ GnBlock residual]
# ---------------------------------------------------------------------------
def _fused_mlp_kernel(*args, num_in, use_ln, d_out, residual_idx,
                      emit_y, emit_res):
    idx = 0
    x_refs = args[idx:idx + num_in]; idx += num_in
    w1_refs = args[idx:idx + num_in]; idx += num_in
    b1 = args[idx][...]; idx += 1          # f32 (1, H)
    w2 = args[idx]; idx += 1               # bf16 (H, H)
    b2 = args[idx][...]; idx += 1
    w3 = args[idx]; idx += 1               # bf16 (H, Dout_pad)
    b3 = args[idx][...]; idx += 1
    if use_ln:
        g = args[idx][...]; idx += 1       # f32 (1, Dout_pad), zero in pads
        beta = args[idx][...]; idx += 1
    outs = args[idx:]

    # Layer 1: fused concat — sum of per-piece matmuls (bf16 MXU, f32 accum).
    acc = None
    for x_ref, w1 in zip(x_refs, w1_refs):
        part = jnp.dot(x_ref[...], w1[...], preferred_element_type=jnp.float32)
        acc = part if acc is None else acc + part
    h = _silu_bf16(acc + b1)                                       # bf16

    h = _silu_bf16(jnp.dot(h, w2[...],
                           preferred_element_type=jnp.float32) + b2)

    y = jnp.dot(h, w3[...], preferred_element_type=jnp.float32) + b3

    if use_ln:
        # Padded output lanes of y are exactly zero (zero-padded w3/b3), so
        # the mean over the padded axis equals the mean over the real lanes.
        # Two-pass (centred) variance with a lane mask to avoid both the
        # E[x^2]-E[x]^2 cancellation and pad-lane pollution after centring.
        inv_d = 1.0 / float(d_out)
        mu = jnp.sum(y, axis=-1, keepdims=True) * inv_d
        lane = jax.lax.broadcasted_iota(jnp.int32, y.shape, 1)
        yc = jnp.where(lane < d_out, y - mu, 0.0)
        var = jnp.sum(yc * yc, axis=-1, keepdims=True) * inv_d
        y = yc * jax.lax.rsqrt(var + 1e-5)
        y = y * g + beta            # g/beta zero in padded lanes -> stays zero

    oi = 0
    if emit_y:
        w = outs[oi].shape[-1]      # may be narrower than the padded width
        outs[oi][...] = y[:, :w].astype(outs[oi].dtype)
        oi += 1
    if emit_res:  # fused GnBlock residual: out = y + input_piece[residual_idx]
        yr = y + x_refs[residual_idx][...].astype(jnp.float32)
        outs[oi][...] = yr.astype(outs[oi].dtype)


def fused_mlp(inputs, p, *, residual_idx=None, want_pre_residual=False,
              out_dtype=jnp.bfloat16, out_cols=None, row_tile=ROW_TILE):
    """Apply a fused build_mlp over row-major inputs (list of (N, D_i) arrays)."""
    n = inputs[0].shape[0]
    num_in = len(inputs)
    use_ln = p["use_ln"]
    dout_pad = p["w3"].shape[1]
    y_cols = dout_pad if out_cols is None else out_cols
    emit_res = residual_idx is not None
    emit_y = (residual_idx is None) or want_pre_residual

    # Row tile: multiple of 16 (bf16 packs 2 rows per sublane); big tiles keep
    # per-grid-step overhead (~0.35us) small relative to the tile's compute.
    tile = min(row_tile, _ceil_to(n, 16))
    grid = (pl.cdiv(n, tile),)

    def row_spec(cols):
        return pl.BlockSpec((tile, cols), lambda i: (i, 0))

    def full_spec(arr):
        return pl.BlockSpec(arr.shape, lambda i: (0, 0))

    consts = list(p["w1s"]) + [p["b1"], p["w2"], p["b2"], p["w3"], p["b3"]]
    if use_ln:
        consts += [p["g"], p["beta"]]
    operands = list(inputs) + consts
    in_specs = ([row_spec(a.shape[1]) for a in inputs]
                + [full_spec(a) for a in consts])

    out_shapes, out_specs = [], []
    if emit_y:
        out_shapes.append(jax.ShapeDtypeStruct((n, y_cols), out_dtype))
        out_specs.append(row_spec(y_cols))
    if emit_res:
        out_shapes.append(jax.ShapeDtypeStruct((n, dout_pad), out_dtype))
        out_specs.append(row_spec(dout_pad))

    kernel = functools.partial(
        _fused_mlp_kernel, num_in=num_in, use_ln=use_ln, d_out=p["d_out"],
        residual_idx=residual_idx, emit_y=emit_y, emit_res=emit_res)

    multi = len(out_shapes) > 1
    out = pl.pallas_call(
        kernel,
        grid=grid,
        in_specs=in_specs,
        out_specs=tuple(out_specs) if multi else out_specs[0],
        out_shape=tuple(out_shapes) if multi else out_shapes[0],
        compiler_params=pltpu.CompilerParams(
            dimension_semantics=("parallel",),
            vmem_limit_bytes=VMEM_LIMIT),
    )(*operands)
    return out


# ---------------------------------------------------------------------------
# Parameter initialisation (matches nn.Linear default init), lane-padded.
# ---------------------------------------------------------------------------
def init_mlp_params(key, in_sizes, hidden, out_size, lay_norm):
    din = sum(in_sizes)
    ks = jax.random.split(key, 6)

    def lin(kw, kb, i, o):
        lim = 1.0 / float(i) ** 0.5
        w = jax.random.uniform(kw, (i, o), jnp.float32, -lim, lim)
        b = jax.random.uniform(kb, (1, o), jnp.float32, -lim, lim)
        return w, b

    w1, b1 = lin(ks[0], ks[1], din, hidden)
    w2, b2 = lin(ks[2], ks[3], hidden, hidden)
    w3, b3 = lin(ks[4], ks[5], hidden, out_size)

    hp = _ceil_to(hidden, LANE)
    dop = _ceil_to(out_size, LANE)

    # Split w1 row-wise per concatenated input piece (fused concat) & zero-pad.
    w1s, off = [], 0
    for d in in_sizes:
        w1s.append(_pad2(w1[off:off + d], _ceil_to(d, LANE), hp)
                   .astype(jnp.bfloat16))
        off += d

    params = {
        "w1s": tuple(w1s),
        "b1": _pad2(b1, 1, hp),
        "w2": _pad2(w2, hp, hp).astype(jnp.bfloat16),
        "b2": _pad2(b2, 1, hp),
        "w3": _pad2(w3, hp, dop).astype(jnp.bfloat16),
        "b3": _pad2(b3, 1, dop),
        "d_out": out_size,
        "use_ln": lay_norm,
    }
    if lay_norm:
        params["g"] = _pad2(jnp.ones((1, out_size), jnp.float32), 1, dop)
        params["beta"] = jnp.zeros((1, dop), jnp.float32)
    return params


def init_model(key, message_passing_num, cell_input_size, edge_input_size,
               edge_output_size, hidden):
    keys = jax.random.split(key, 3 + 2 * message_passing_num)
    half = hidden // 2
    params = {
        "hidden": hidden,
        "enc_cell": init_mlp_params(keys[0], [cell_input_size], hidden, hidden,
                                    lay_norm=True),
        "enc_edge": init_mlp_params(keys[1], [edge_input_size], hidden, hidden,
                                    lay_norm=True),
        "dec_edge": init_mlp_params(keys[2], [hidden], hidden,
                                    edge_output_size, lay_norm=False),
        "blocks": [],
    }
    for m in range(message_passing_num):
        cb = init_mlp_params(keys[3 + 2 * m], [hidden, half], hidden, hidden,
                             lay_norm=True)
        eb = init_mlp_params(keys[4 + 2 * m], [hidden, hidden, hidden], hidden,
                             hidden, lay_norm=True)
        params["blocks"].append((cb, eb))
    return params


# ---------------------------------------------------------------------------
# EncoderProcesserDecoder.forward  (dual_edge=False, drop_out unused)
# ---------------------------------------------------------------------------
def encoder_processer_decoder(params, cell_attr, edge_attr, edge_index,
                              graph_node=None):
    hidden = params["hidden"]
    half = hidden // 2
    half_pad = _ceil_to(half, LANE)
    num_cells = cell_attr.shape[0]
    num_edges = edge_attr.shape[0]
    senders, receivers = edge_index[0], edge_index[1]

    # Lane-pad + cast raw inputs to bf16 (feature widths -> multiples of 128).
    x_in = _pad_lanes(cell_attr,
                      params["enc_cell"]["w1s"][0].shape[0]).astype(jnp.bfloat16)
    e_in = _pad_lanes(edge_attr,
                      params["enc_edge"]["w1s"][0].shape[0]).astype(jnp.bfloat16)

    # Encoder: per-entity MLP + LayerNorm.
    x = fused_mlp([x_in], params["enc_cell"])     # (C, Hp) bf16, pad lanes = 0
    e = fused_mlp([e_in], params["enc_edge"])     # (E, Hp) bf16, pad lanes = 0

    # edge_index is static across MP steps: hoist the receiver in-degree and
    # its reciprocal out of the loop (one scatter total, not one per block).
    deg = jax.ops.segment_sum(jnp.ones((num_edges, 1), jnp.float32),
                              receivers, num_segments=num_cells)
    inv_deg = 1.0 / jnp.maximum(deg, 1.0)

    # Processer: message_passing_num GnBlocks with residual connections.
    for cb_p, eb_p in params["blocks"]:
        # CellBlock: scatter-mean the first `half` edge channels onto receiver
        # cells, then MLP over (cell state, aggregate) — concat fused in-kernel.
        # The scatter accumulates directly into a lane-padded (C, half_pad)
        # slab (extra lanes hit zero rows of W1b so they never affect the
        # result); the mean and bf16 cast fuse into one elementwise pass.
        # TODO(synk): exact FVGN CellBlock/EdgeBlock (mp_times, MultiHead,
        # graph_node usage) source not provided; MeshGraphNet-style
        # scatter-mean / gather consistent with the declared input widths.
        agg = jax.ops.segment_sum(e[:, :half_pad].astype(jnp.float32),
                                  receivers, num_segments=num_cells)
        agg = (agg * inv_deg).astype(jnp.bfloat16)

        # cb MLP: h = x@W1a + agg@W1b (+ b1); residual x_last + x_new fused as
        # a second output (x_last is input piece 0, so the add is free).
        x_new, x_res = fused_mlp([x, agg], cb_p, residual_idx=0,
                                 want_pre_residual=True)

        # EdgeBlock: h = x_new[snd]@W1a + x_new[rcv]@W1b + e@W1c (+ b1);
        # residual e_last + e_new fused (e_last is input piece 2).
        # TODO(synk): fuse these gathers into the Pallas edge kernel (scalar-
        # prefetched indices + VMEM-resident x_new); arbitrary row gather is
        # not a robust Mosaic vector op, so it stays in XLA for correctness.
        xs = jnp.take(x_new, senders, axis=0)
        xr = jnp.take(x_new, receivers, axis=0)
        e = fused_mlp([xs, xr, e], eb_p, residual_idx=2)

        x = x_res

    # Decoder (dual_edge=False): edge decode only, no LayerNorm / dropout.
    # Emit the true (E, d_out) f32 output directly (masked narrow stores beat
    # writing a 128-lane f32 slab and re-reading it for an XLA slice).
    edge_decoded_attr = fused_mlp([e], params["dec_edge"],
                                  out_dtype=jnp.float32,
                                  out_cols=params["dec_edge"]["d_out"])
    cell_decoded_attr = False  # Decoder.forward returns (False, edge_decoded)
    return cell_decoded_attr, edge_decoded_attr


# ---------------------------------------------------------------------------
if __name__ == "__main__":
    key = jax.random.PRNGKey(0)
    k_cell, k_edge, k_idx, k_param = jax.random.split(key, 4)

    # Small synthetic graph
    C, E = 32, 64                 # cells, edges
    cell_input_size = 2
    edge_input_size = 3
    edge_output_size = 7
    hidden = 32
    message_passing_num = 2

    cell_attr = jax.random.normal(k_cell, (C, cell_input_size), jnp.float32)
    edge_attr = jax.random.normal(k_edge, (E, edge_input_size), jnp.float32)
    edge_index = jax.random.randint(k_idx, (2, E), 0, C, dtype=jnp.int32)

    params = init_model(k_param, message_passing_num, cell_input_size,
                        edge_input_size, edge_output_size, hidden)

    cell_decoded, edge_decoded = encoder_processer_decoder(
        params, cell_attr, edge_attr, edge_index, graph_node=None)

    jax.block_until_ready(edge_decoded)
    assert cell_decoded is False
    assert edge_decoded.shape == (E, edge_output_size)
    assert edge_decoded.dtype == jnp.float32
    assert bool(jnp.all(jnp.isfinite(edge_decoded)))
    print("KERNEL_OK")
</pallas_src>

<mosaic_0001>
module attributes {stable_mosaic.version = 11 : i64} {
  func.func @_fused_mlp_kernel(%arg0: i32, %arg1: memref<32x128xbf16, #tpu.memory_space<vmem>>, %arg2: memref<128x128xbf16, #tpu.memory_space<vmem>>, %arg3: memref<1x128xf32, #tpu.memory_space<vmem>>, %arg4: memref<128x128xbf16, #tpu.memory_space<vmem>>, %arg5: memref<1x128xf32, #tpu.memory_space<vmem>>, %arg6: memref<128x128xbf16, #tpu.memory_space<vmem>>, %arg7: memref<1x128xf32, #tpu.memory_space<vmem>>, %arg8: memref<1x128xf32, #tpu.memory_space<vmem>>, %arg9: memref<1x128xf32, #tpu.memory_space<vmem>>, %arg10: memref<32x128xbf16, #tpu.memory_space<vmem>>) attributes {dimension_semantics = [#tpu.dimension_semantics<parallel>], iteration_bounds = array<i64: 1>, scalar_prefetch = 0 : i64, scratch_operands = 0 : i64, tpu.core_type = #tpu.core_type<tc>, window_params = [{transform_indices = @transform_0, window_bounds = array<i64: 32, 128>}, {pipeline_mode = #tpu.pipeline_mode<synchronous>, transform_indices = @transform_1, window_bounds = array<i64: 128, 128>}, {pipeline_mode = #tpu.pipeline_mode<synchronous>, transform_indices = @transform_2, window_bounds = array<i64: 1, 128>}, {pipeline_mode = #tpu.pipeline_mode<synchronous>, transform_indices = @transform_3, window_bounds = array<i64: 128, 128>}, {pipeline_mode = #tpu.pipeline_mode<synchronous>, transform_indices = @transform_4, window_bounds = array<i64: 1, 128>}, {pipeline_mode = #tpu.pipeline_mode<synchronous>, transform_indices = @transform_5, window_bounds = array<i64: 128, 128>}, {pipeline_mode = #tpu.pipeline_mode<synchronous>, transform_indices = @transform_6, window_bounds = array<i64: 1, 128>}, {pipeline_mode = #tpu.pipeline_mode<synchronous>, transform_indices = @transform_7, window_bounds = array<i64: 1, 128>}, {pipeline_mode = #tpu.pipeline_mode<synchronous>, transform_indices = @transform_8, window_bounds = array<i64: 1, 128>}, {transform_indices = @transform_9, window_bounds = array<i64: 32, 128>}]} {
    %c0 = arith.constant 0 : index
    %c0_0 = arith.constant 0 : index
    %0 = vector.load %arg3[%c0, %c0_0] : memref<1x128xf32, #tpu.memory_space<vmem>>, vector<1x128xf32>
    %c0_1 = arith.constant 0 : index
    %c0_2 = arith.constant 0 : index
    %1 = vector.load %arg5[%c0_1, %c0_2] : memref<1x128xf32, #tpu.memory_space<vmem>>, vector<1x128xf32>
    %c0_3 = arith.constant 0 : index
    %c0_4 = arith.constant 0 : index
    %2 = vector.load %arg7[%c0_3, %c0_4] : memref<1x128xf32, #tpu.memory_space<vmem>>, vector<1x128xf32>
    %c0_5 = arith.constant 0 : index
    %c0_6 = arith.constant 0 : index
    %3 = vector.load %arg8[%c0_5, %c0_6] : memref<1x128xf32, #tpu.memory_space<vmem>>, vector<1x128xf32>
    %c0_7 = arith.constant 0 : index
    %c0_8 = arith.constant 0 : index
    %4 = vector.load %arg9[%c0_7, %c0_8] : memref<1x128xf32, #tpu.memory_space<vmem>>, vector<1x128xf32>
    %c0_9 = arith.constant 0 : index
    %c0_10 = arith.constant 0 : index
    %5 = vector.load %arg1[%c0_9, %c0_10] : memref<32x128xbf16, #tpu.memory_space<vmem>>, vector<32x128xbf16>
    %c0_11 = arith.constant 0 : index
    %c0_12 = arith.constant 0 : index
    %6 = vector.load %arg2[%c0_11, %c0_12] : memref<128x128xbf16, #tpu.memory_space<vmem>>, vector<128x128xbf16>
    %cst = arith.constant dense<0.000000e+00> : vector<32x128xf32>
    %7 = tpu.matmul %5, %6, %cst {dimension_numbers = #tpu.dot_dimension_numbers<[1], [0], [0], [1], [0, 0, 1, 1], [], []>} : vector<32x128xbf16>, vector<128x128xbf16>, vector<32x128xf32> -> vector<32x128xf32>
    %8 = vector.broadcast %0 : vector<1x128xf32> to vector<32x128xf32>
    %9 = arith.addf %7, %8 : vector<32x128xf32>
    %10 = arith.truncf %9 : vector<32x128xf32> to vector<32x128xbf16>
    %cst_13 = arith.constant 5.000000e-01 : bf16
    %11 = vector.broadcast %cst_13 : bf16 to vector<32x128xbf16>
    %12 = arith.mulf %11, %10 : vector<32x128xbf16>
    %13 = math.tanh %12 : vector<32x128xbf16>
    %cst_14 = arith.constant 5.000000e-01 : bf16
    %14 = vector.broadcast %cst_14 : bf16 to vector<32x128xbf16>
    %15 = arith.mulf %14, %13 : vector<32x128xbf16>
    %cst_15 = arith.constant 5.000000e-01 : bf16
    %16 = vector.broadcast %cst_15 : bf16 to vector<32x128xbf16>
    %17 = arith.addf %15, %16 : vector<32x128xbf16>
    %18 = arith.mulf %10, %17 : vector<32x128xbf16>
    %c0_16 = arith.constant 0 : index
    %c0_17 = arith.constant 0 : index
    %19 = vector.load %arg4[%c0_16, %c0_17] : memref<128x128xbf16, #tpu.memory_space<vmem>>, vector<128x128xbf16>
    %cst_18 = arith.constant dense<0.000000e+00> : vector<32x128xf32>
    %20 = tpu.matmul %18, %19, %cst_18 {dimension_numbers = #tpu.dot_dimension_numbers<[1], [0], [0], [1], [0, 0, 1, 1], [], []>} : vector<32x128xbf16>, vector<128x128xbf16>, vector<32x128xf32> -> vector<32x128xf32>
    %21 = vector.broadcast %1 : vector<1x128xf32> to vector<32x128xf32>
    %22 = arith.addf %20, %21 : vector<32x128xf32>
    %23 = arith.truncf %22 : vector<32x128xf32> to vector<32x128xbf16>
    %cst_19 = arith.constant 5.000000e-01 : bf16
    %24 = vector.broadcast %cst_19 : bf16 to vector<32x128xbf16>
    %25 = arith.mulf %24, %23 : vector<32x128xbf16>
    %26 = math.tanh %25 : vector<32x128xbf16>
    %cst_20 = arith.constant 5.000000e-01 : bf16
    %27 = vector.broadcast %cst_20 : bf16 to vector<32x128xbf16>
    %28 = arith.mulf %27, %26 : vector<32x128xbf16>
    %cst_21 = arith.constant 5.000000e-01 : bf16
    %29 = vector.broadcast %cst_21 : bf16 to vector<32x128xbf16>
    %30 = arith.addf %28, %29 : vector<32x128xbf16>
    %31 = arith.mulf %23, %30 : vector<32x128xbf16>
    %c0_22 = arith.constant 0 : index
    %c0_23 = arith.constant 0 : index
    %32 = vector.load %arg6[%c0_22, %c0_23] : memref<128x128xbf16, #tpu.memory_space<vmem>>, vector<128x128xbf16>
    %cst_24 = arith.constant dense<0.000000e+00> : vector<32x128xf32>
    %33 = tpu.matmul %31, %32, %cst_24 {dimension_numbers = #tpu.dot_dimension_numbers<[1], [0], [0], [1], [0, 0, 1, 1], [], []>} : vector<32x128xbf16>, vector<128x128xbf16>, vector<32x128xf32> -> vector<32x128xf32>
    %34 = vector.broadcast %2 : vector<1x128xf32> to vector<32x128xf32>
    %35 = arith.addf %33, %34 : vector<32x128xf32>
    %cst_25 = arith.constant dense<0.000000e+00> : vector<32xf32>
    %36 = vector.multi_reduction <add>, %35, %cst_25 [1] : vector<32x128xf32> to vector<32xf32>
    %37 = vector.shape_cast %36 : vector<32xf32> to vector<32x1xf32>
    %cst_26 = arith.constant 3.125000e-02 : f32
    %38 = vector.broadcast %cst_26 : f32 to vector<32x1xf32>
    %39 = arith.mulf %37, %38 : vector<32x1xf32>
    %40 = tpu.iota {dimensions = array<i32: 1>} : vector<32x128xi32>
    %c32_i32 = arith.constant 32 : i32
    %41 = vector.broadcast %c32_i32 : i32 to vector<32x128xi32>
    %42 = arith.cmpi slt, %40, %41 : vector<32x128xi32>
    %43 = vector.broadcast %39 : vector<32x1xf32> to vector<32x128xf32>
    %44 = arith.subf %35, %43 : vector<32x128xf32>
    %cst_27 = arith.constant 0.000000e+00 : f32
    %45 = vector.broadcast %cst_27 : f32 to vector<32x128xf32>
    %46 = arith.select %42, %44, %45 : vector<32x128xi1>, vector<32x128xf32>
    %47 = arith.mulf %46, %46 : vector<32x128xf32>
    %cst_28 = arith.constant dense<0.000000e+00> : vector<32xf32>
    %48 = vector.multi_reduction <add>, %47, %cst_28 [1] : vector<32x128xf32> to vector<32xf32>
    %49 = vector.shape_cast %48 : vector<32xf32> to vector<32x1xf32>
    %cst_29 = arith.constant 3.125000e-02 : f32
    %50 = vector.broadcast %cst_29 : f32 to vector<32x1xf32>
    %51 = arith.mulf %49, %50 : vector<32x1xf32>
    %cst_30 = arith.constant 9.99999974E-6 : f32
    %52 = vector.broadcast %cst_30 : f32 to vector<32x1xf32>
    %53 = arith.addf %51, %52 : vector<32x1xf32>
    %54 = math.rsqrt %53 : vector<32x1xf32>
    %55 = vector.broadcast %54 : vector<32x1xf32> to vector<32x128xf32>
    %56 = arith.mulf %46, %55 : vector<32x128xf32>
    %57 = vector.broadcast %3 : vector<1x128xf32> to vector<32x128xf32>
    %58 = arith.mulf %56, %57 : vector<32x128xf32>
    %59 = vector.broadcast %4 : vector<1x128xf32> to vector<32x128xf32>
    %60 = arith.addf %58, %59 : vector<32x128xf32>
    %61 = arith.truncf %60 : vector<32x128xf32> to vector<32x128xbf16>
    %c0_31 = arith.constant 0 : index
    %c0_32 = arith.constant 0 : index
    %62 = vector.load %arg10[%c0_31, %c0_32] : memref<32x128xbf16, #tpu.memory_space<vmem>>, vector<32x128xbf16>
    tpu.vector_store %arg10[%c0_31, %c0_32], %61 {strides = array<i32>} : memref<32x128xbf16, #tpu.memory_space<vmem>>, vector<32x128xbf16>,
    return
  }
  func.func @transform_0(%arg0: i32) -> (i32, i32) {
    %c0_i32 = arith.constant 0 : i32
    %c0_i32_0 = arith.constant 0 : i32
    return %arg0, %c0_i32 : i32, i32
  }
  func.func @transform_1(%arg0: i32) -> (i32, i32) {
    %c0_i32 = arith.constant 0 : i32
    %c0_i32_0 = arith.constant 0 : i32
    %c0_i32_1 = arith.constant 0 : i32
    return %c0_i32, %c0_i32_0 : i32, i32
  }
  func.func @transform_2(%arg0: i32) -> (i32, i32) {
    %c0_i32 = arith.constant 0 : i32
    %c0_i32_0 = arith.constant 0 : i32
    %c0_i32_1 = arith.constant 0 : i32
    return %c0_i32, %c0_i32_0 : i32, i32
  }
  func.func @transform_3(%arg0: i32) -> (i32, i32) {
    %c0_i32 = arith.constant 0 : i32
    %c0_i32_0 = arith.constant 0 : i32
    %c0_i32_1 = arith.constant 0 : i32
    return %c0_i32, %c0_i32_0 : i32, i32
  }
  func.func @transform_4(%arg0: i32) -> (i32, i32) {
    %c0_i32 = arith.constant 0 : i32
    %c0_i32_0 = arith.constant 0 : i32
    %c0_i32_1 = arith.constant 0 : i32
    return %c0_i32, %c0_i32_0 : i32, i32
  }
  func.func @transform_5(%arg0: i32) -> (i32, i32) {
    %c0_i32 = arith.constant 0 : i32
    %c0_i32_0 = arith.constant 0 : i32
    %c0_i32_1 = arith.constant 0 : i32
    return %c0_i32, %c0_i32_0 : i32, i32
  }
  func.func @transform_6(%arg0: i32) -> (i32, i32) {
    %c0_i32 = arith.constant 0 : i32
    %c0_i32_0 = arith.constant 0 : i32
    %c0_i32_1 = arith.constant 0 : i32
    return %c0_i32, %c0_i32_0 : i32, i32
  }
  func.func @transform_7(%arg0: i32) -> (i32, i32) {
    %c0_i32 = arith.constant 0 : i32
    %c0_i32_0 = arith.constant 0 : i32
    %c0_i32_1 = arith.constant 0 : i32
    return %c0_i32, %c0_i32_0 : i32, i32
  }
  func.func @transform_8(%arg0: i32) -> (i32, i32) {
    %c0_i32 = arith.constant 0 : i32
    %c0_i32_0 = arith.constant 0 : i32
    %c0_i32_1 = arith.constant 0 : i32
    return %c0_i32, %c0_i32_0 : i32, i32
  }
  func.func @transform_9(%arg0: i32) -> (i32, i32) {
    %c0_i32 = arith.constant 0 : i32
    %c0_i32_0 = arith.constant 0 : i32
    return %arg0, %c0_i32 : i32, i32
  }
}

</mosaic_0001>

<bundles_post_ra>
// kernel: tpu_custom_call.1
= control target key start
LH: loop header
LB: loop body
LE: loop exit
PB: predicated region body
PF: predicated region fallthrough
CT: control target
= control target key end

     0   :  { %14 = vsyncpa [#allocation3], 0  ;;  %s1074_s0 = inlined_call_operand.hbm [shape: bf16[32,128], index: 0, kind: input, shape index: {}]   ;;  %s1075_s1 = inlined_call_operand.hbm [shape: bf16[128,128], index: 1, kind: input, shape index: {}]   ;;  %s1076_s2 = inlined_call_operand.vmem [shape: f32[1,128], index: 2, kind: input, shape index: {}]   ;;  %s1077_s3 = inlined_call_operand.hbm [shape: bf16[128,128], index: 3, kind: input, shape index: {}]   ;;  %s1078_s4 = inlined_call_operand.vmem [shape: f32[1,128], index: 4, kind: input, shape index: {}]   ;;  %s1079_s5 = inlined_call_operand.hbm [shape: bf16[128,128], index: 5, kind: input, shape index: {}]   ;;  %s1080_s6 = inlined_call_operand.vmem [shape: f32[1,128], index: 6, kind: input, shape index: {}]   ;;  %s1081_s7 = inlined_call_operand.vmem [shape: f32[1,128], index: 7, kind: input, shape index: {}]   ;;  %s1082_s8 = inlined_call_operand.vmem [shape: f32[1,128], index: 8, kind: input, shape index: {}]   ;;  %s1083_s9 = inlined_call_operand.hbm [shape: bf16[32,128], index: 9, kind: output, shape index: {}]  }
   0x1   :  { %15 = vsyncpa [#allocation6], 0 }
   0x2   :  { %16 = vsyncpa [#allocation9], 0 }
   0x3   :  { %17 = vsyncpa [#allocation4], 0  ;;  %s909_s30 = smov [#allocation5]   ;;  %s910_s11 = smov [#allocation2]  }
   0x4   :  { %s35_s10 = sshll.u32 %s909_s30, 4  ;;  %s23_s12 = sshll.u32 %s910_s11, 4  ;;  %s36_s10 = int_to_ptr.vmem [resolvable:$true] %s35_s10  ;;  %s966_s12 = int_to_ptr.vmem [resolvable:$true] %s23_s12 }
   0x5   :  { %s791_s15 = scalar_lea.hbm %s1075_s1, 1024 }
   0x6   :  { %p792_p0 = scmp.ne.s32.totalorder %s1075_s1, %s791_s15  ;;  %p795_p1 = scmp.lt.u32.totalorder %s791_s15, %s1075_s1 }
   0x8   :  { %p797_p2 = pnand %p795_p1, %p792_p0 }
   0xa   :  { %800 = shalt.err (!%p797_p2)
}
   0xb   :  { %s801_s20 = scalar_lea.vmem %s36_s10, 1024  ;;  %p806_p4 = scmp.lt.s32.totalorder %s36_s10, %s36_s10 }
   0xc   :  { %p802_p3 = scmp.ne.s32.totalorder %s36_s10, %s801_s20  ;;  %p807_p5 = scmp.lt.s32.totalorder %s801_s20, %s801_s20 }
   0xe   :  { %p808_p6 = por %p807_p5, %p806_p4 }
  0x10   :  { %p809_p7 = pnand %p808_p6, %p802_p3 }
  0x12   :  { %812 = shalt.err (!%p809_p7)
}
  0x13   :  { %s911_s21 = smov 64   ;;  %s912_s22 = smov 4  }
  0x14   :  { %41 = dma.hbm_to_vmem [thread:$0]  %s1075_s1, 1024, %s36_s10, [#allocation6], %s911_s21, %s911_s21, %s912_s22  }
  0x15   :  { %s813_s27 = scalar_lea.hbm %s1074_s0, 256 }
  0x16   :  { %p814_p8 = scmp.ne.s32.totalorder %s1074_s0, %s813_s27  ;;  %p817_p9 = scmp.lt.u32.totalorder %s813_s27, %s1074_s0 }
  0x18   :  { %p819_p10 = pnand %p817_p9, %p814_p8 }
  0x1a   :  { %822 = shalt.err (!%p819_p10)
}
  0x1b   :  { %s823_s13 = scalar_lea.vmem %s966_s12, 256  ;;  %p828_p12 = scmp.lt.s32.totalorder %s966_s12, %s966_s12 }
  0x1c   :  { %p824_p11 = scmp.ne.s32.totalorder %s966_s12, %s823_s13  ;;  %p829_p13 = scmp.lt.s32.totalorder %s823_s13, %s823_s13 }
  0x1e   :  { %p830_p0 = por %p829_p13, %p828_p12 }
  0x20   :  { %p831_p1 = pnand %p830_p0, %p824_p11 }
  0x22   :  { %834 = shalt.err (!%p831_p1)
}
  0x23   :  { %29 = dma.hbm_to_vmem [thread:$0]  %s1074_s0, 256, %s966_s12, [#allocation3], %s911_s21, %s911_s21, %s912_s22  }
  0x24   :  { %s913_s14 = smov [#allocation7]   ;;  %s914_s16 = smov [#allocation8]  }
  0x25   :  { %s49_s15 = sshll.u32 %s913_s14, 4  ;;  %s63_s17 = sshll.u32 %s914_s16, 4  ;;  %s50_s15 = int_to_ptr.vmem [resolvable:$true] %s49_s15  ;;  %s1003_s17 = int_to_ptr.vmem [resolvable:$true] %s63_s17 }
  0x26   :  { %s835_s20 = scalar_lea.hbm %s1077_s3, 1024 }
  0x27   :  { %p836_p2 = scmp.ne.s32.totalorder %s1077_s3, %s835_s20  ;;  %p839_p3 = scmp.lt.u32.totalorder %s835_s20, %s1077_s3 }
  0x29   :  { %p841_p4 = pnand %p839_p3, %p836_p2 }
  0x2b   :  { %844 = shalt.err (!%p841_p4)
}
  0x2c   :  { %s845_s0 = scalar_lea.vmem %s50_s15, 1024  ;;  %p850_p6 = scmp.lt.s32.totalorder %s50_s15, %s50_s15 }
  0x2d   :  { %p846_p5 = scmp.ne.s32.totalorder %s50_s15, %s845_s0  ;;  %p851_p7 = scmp.lt.s32.totalorder %s845_s0, %s845_s0 }
  0x2f   :  { %p852_p8 = por %p851_p7, %p850_p6 }
  0x31   :  { %p853_p9 = pnand %p852_p8, %p846_p5 }
  0x33   :  { %856 = shalt.err (!%p853_p9)
}
  0x34   :  { %55 = dma.hbm_to_vmem [thread:$0]  %s1077_s3, 1024, %s50_s15, [#allocation6], %s911_s21, %s911_s21, %s912_s22  }
  0x35   :  { %s857_s30 = scalar_lea.hbm %s1079_s5, 1024 }
  0x36   :  { %p858_p10 = scmp.ne.s32.totalorder %s1079_s5, %s857_s30  ;;  %p861_p11 = scmp.lt.u32.totalorder %s857_s30, %s1079_s5 }
  0x38   :  { %p863_p12 = pnand %p861_p11, %p858_p10 }
  0x3a   :  { %866 = shalt.err (!%p863_p12)
}
  0x3b   :  { %s867_s14 = scalar_lea.vmem %s1003_s17, 1024  ;;  %p872_p0 = scmp.lt.s32.totalorder %s1003_s17, %s1003_s17 }
  0x3c   :  { %p868_p13 = scmp.ne.s32.totalorder %s1003_s17, %s867_s14  ;;  %p873_p1 = scmp.lt.s32.totalorder %s867_s14, %s867_s14 }
  0x3e   :  { %p874_p2 = por %p873_p1, %p872_p0 }
  0x40   :  { %p875_p3 = pnand %p874_p2, %p868_p13 }
  0x42   :  { %878 = shalt.err (!%p875_p3)
}
  0x43   :  { %69 = dma.hbm_to_vmem [thread:$0]  %s1079_s5, 1024, %s1003_s17, [#allocation9], %s911_s21, %s911_s21, %s912_s22  }
  0x44   :  { %901 = dma.done.wait [#allocation3], 256  }
  0x45   :  { %902 = vsyncadd [#allocation3], 4294967040 }
  0x46   :  { %903 = dma.done.wait [#allocation6], 2048  }
  0x47   :  { %904 = vsyncadd [#allocation6], 4294965248 }
  0x48   :  { %905 = dma.done.wait [#allocation9], 1024  }
  0x49   :  { %906 = vsyncadd [#allocation9], 4294966272  ;;  %v749_v0 = vld [vmem:[#allocation5] sm:$0xff]   ;;  %v750_v1 = vld [vmem:[#allocation5 + $0x8] sm:$0xff]   ;;  %s915_s24 = smov [#allocation10]  }
  0x4a   :  { %682 = vmatprep.subr.bf16.mxu0 %v749_v0  ;;  %v751_v2 = vld [vmem:[#allocation5 + $0x10] sm:$0xff]   ;;  %v752_v3 = vld [vmem:[#allocation5 + $0x18] sm:$0xff]   ;;  %v753_v5 = vld [vmem:[#allocation5 + $0x20] sm:$0xff]   ;;  %s588_s25 = sshll.u32 %s915_s24, 4  ;;  %s589_s25 = int_to_ptr.vmem [resolvable:$true] %s588_s25 }
  0x4b   :  { %683 = vmatpush3.bf16.msra.mxu0 %v749_v0  ;;  %v757_v4 = vld [vmem:[#allocation2] sm:$0xff]   ;;  %v759_v6 = vld [vmem:[#allocation7] sm:$0xff]   ;;  %v754_v7 = vld [vmem:[#allocation5 + $0x28] sm:$0xff]   ;;  %p884_p5 = scmp.lt.s32.totalorder %s589_s25, %s589_s25 }
  0x4c   :  { %684 = vmatprep.subr.bf16.mxu0 %v750_v1  ;;  %698 = vmatprep.mubr.bf16.mxu0 %v757_v4  ;;  %v755_v8 = vld [vmem:[#allocation5 + $0x30] sm:$0xff]   ;;  %v756_v9 = vld [vmem:[#allocation5 + $0x38] sm:$0xff]   ;;  %v760_v11 = vld [vmem:[#allocation7 + $0x8] sm:$0xff]  }
  0x4d   :  { %702 = vmatprep.subr.bf16.mxu1 %v759_v6  ;;  %v758_v10 = vld [vmem:[#allocation2 + $0x8] sm:$0xff]   ;;  %v761_v12 = vld [vmem:[#allocation7 + $0x10] sm:$0xff]   ;;  %v763_v14 = vld [vmem:[#allocation7 + $0x20] sm:$0xff]  }
  0x4e   :  { %703 = vmatpush3.bf16.msra.mxu1 %v759_v6  ;;  %v762_v13 = vld [vmem:[#allocation7 + $0x18] sm:$0xff]   ;;  %v764_v15 = vld [vmem:[#allocation7 + $0x28] sm:$0xff]   ;;  %v765_v16 = vld [vmem:[#allocation7 + $0x30] sm:$0xff]  }
  0x4f   :  { %685 = vmatpush3.bf16.msra.mxu0 %v750_v1  ;;  %704 = vmatprep.subr.bf16.mxu1 %v760_v11  ;;  %v766_v17 = vld [vmem:[#allocation7 + $0x38] sm:$0xff]   ;;  %v767_v18 = vld [vmem:[#allocation8] sm:$0xff]   ;;  %v602_v20 = vld [vmem:[%s1076_s2] ss:$0 sm:$0xff] }
  0x50   :  { %686 = vmatprep.subr.bf16.mxu0 %v751_v2  ;;  %v768_v40 = vld [vmem:[#allocation8 + $0x8] sm:$0xff]   ;;  %v769_v41 = vld [vmem:[#allocation8 + $0x10] sm:$0xff]   ;;  %v770_v42 = vld [vmem:[#allocation8 + $0x18] sm:$0xff]  }
  0x51   :  { %v771_v43 = vld [vmem:[#allocation8 + $0x20] sm:$0xff]   ;;  %v772_v44 = vld [vmem:[#allocation8 + $0x28] sm:$0xff]   ;;  %v773_v45 = vld [vmem:[#allocation8 + $0x30] sm:$0xff]  }
  0x52   :  { %705 = vmatpush3.bf16.msra.mxu1 %v760_v11  ;;  %v774_v46 = vld [vmem:[#allocation8 + $0x38] sm:$0xff]   ;;  %v613_v48 = vld [vmem:[%s1078_s4] ss:$0 sm:$0xff] }
  0x53   :  { %687 = vmatpush3.bf16.msra.mxu0 %v751_v2  ;;  %706 = vmatprep.subr.bf16.mxu1 %v761_v12  ;;  %v622_v4 = vld [vmem:[%s1080_s6] ss:$0 sm:$0xff] }
  0x54   :  { %688 = vmatprep.subr.bf16.mxu0 %v752_v3 }
  0x56   :  { %707 = vmatpush3.bf16.msra.mxu1 %v761_v12 }
  0x57   :  { %689 = vmatpush3.bf16.msra.mxu0 %v752_v3  ;;  %708 = vmatprep.subr.bf16.mxu1 %v762_v13 }
  0x58   :  { %690 = vmatprep.subr.bf16.mxu0 %v753_v5 }
  0x5a   :  { %709 = vmatpush3.bf16.msra.mxu1 %v762_v13  ;;  %v504_v13 = vlaneseq }
  0x5b   :  { %691 = vmatpush3.bf16.msra.mxu0 %v753_v5  ;;  %710 = vmatprep.subr.bf16.mxu1 %v763_v14 }
  0x5c   :  { %692 = vmatprep.subr.bf16.mxu0 %v754_v7 }
  0x5e   :  { %711 = vmatpush3.bf16.msra.mxu1 %v763_v14  ;;  %v505_v14 = vand.u32 127, %v504_v13 }
  0x5f   :  { %693 = vmatpush3.bf16.msra.mxu0 %v754_v7  ;;  %712 = vmatprep.subr.bf16.mxu1 %v764_v15 }
  0x60   :  { %694 = vmatprep.subr.bf16.mxu0 %v755_v8  ;;  %vm506_vm0 = vcmp.lt.s32.totalorder %v505_v14, 32 }
  0x62   :  { %713 = vmatpush3.bf16.msra.mxu1 %v764_v15 }
  0x63   :  { %695 = vmatpush3.bf16.msra.mxu0 %v755_v8  ;;  %714 = vmatprep.subr.bf16.mxu1 %v765_v16 }
  0x64   :  { %696 = vmatprep.subr.bf16.mxu0 %v756_v9 }
  0x66   :  { %715 = vmatpush3.bf16.msra.mxu1 %v765_v16 }
  0x67   :  { %697 = vmatpush3.bf16.msra.mxu0 %v756_v9  ;;  %716 = vmatprep.subr.bf16.mxu1 %v766_v17 }
  0x68   :  { %722 = vmatprep.subr.bf16.mxu0 %v767_v18 }
  0x6a   :  { %699 = vmatmul.mubr.bf16.vlgmr.msra.gmra.mrb[0].mxu0 %v758_v10  ;;  %717 = vmatpush3.bf16.msra.mxu1 %v766_v17 }
  0x6b   :  { %723 = vmatpush3.bf16.msra.mxu0 %v767_v18 }
  0x6c   :  { %724 = vmatprep.subr.bf16.mxu0 %v768_v40 }
  0x6f   :  { %725 = vmatpush3.bf16.msra.mxu0 %v768_v40 }
  0x70   :  { %726 = vmatprep.subr.bf16.mxu0 %v769_v41 }
  0x73   :  { %727 = vmatpush3.bf16.msra.mxu0 %v769_v41 }
  0x74   :  { %728 = vmatprep.subr.bf16.mxu0 %v770_v42 }
  0x77   :  { %729 = vmatpush3.bf16.msra.mxu0 %v770_v42 }
  0x78   :  { %730 = vmatprep.subr.bf16.mxu0 %v771_v43 }
  0x7b   :  { %731 = vmatpush3.bf16.msra.mxu0 %v771_v43 }
  0x7c   :  { %732 = vmatprep.subr.bf16.mxu0 %v772_v44 }
  0x7f   :  { %733 = vmatpush3.bf16.msra.mxu0 %v772_v44 }
  0x80   :  { %734 = vmatprep.subr.bf16.mxu0 %v773_v45 }
  0x83   :  { %735 = vmatpush3.bf16.msra.mxu0 %v773_v45 }
  0x84   :  { %736 = vmatprep.subr.bf16.mxu0 %v774_v46 }
  0x87   :  { %737 = vmatpush3.bf16.msra.mxu0 %v774_v46 }
 0x13d   :  { %v700_v19 = vpop.f32.mrb[0].mxu0 }
 0x13e   :  { %v215_v21 = vpop.f32.mrb[1].mxu0  ;;  %v224_v23 = vadd.f32 %v700_v19, %v602_v20 }
 0x13f   :  { %v701_v22 = vpop.f32.mrb[2].mxu0  ;;  %v216_v26 = vadd.f32 %v602_v20, %v215_v21 }
 0x140   :  { %v227_v24 = vadd.f32 %v701_v22, %v602_v20  ;;  %v218_v25 = vpop.f32.mrb[3].mxu0 }
 0x141   :  { %v219_v27 = vadd.f32 %v602_v20, %v218_v25 }
 0x142   :  { %v231_v28 = vpack.c.bf16 %v227_v24, %v224_v23 }
 0x143   :  { %v230_v29 = vpack.c.bf16 %v219_v27, %v216_v26 }
 0x144   :  { %v233_v30 = vmul.bf16 1056980736, %v231_v28 }
 0x145   :  { %v232_v31 = vmul.bf16 1056980736, %v230_v29 }
 0x146   :  { %775 = vtanh.bf16 %v233_v30 }
 0x147   :  { %777 = vtanh.bf16 %v232_v31 }
 0x151   :  { %v776_v32 = vpop.eup %775 }
 0x152   :  { %v778_v33 = vpop.eup %777  ;;  %v237_v34 = vmul.bf16 1056980736, %v776_v32 }
 0x153   :  { %v236_v35 = vmul.bf16 1056980736, %v778_v33 }
 0x154   :  { %v239_v36 = vadd.bf16 1056980736, %v237_v34 }
 0x155   :  { %v238_v37 = vadd.bf16 1056980736, %v236_v35 }
 0x156   :  { %v241_v39 = vmul.bf16 %v239_v36, %v231_v28 }
 0x157   :  { %v240_v38 = vmul.bf16 %v238_v37, %v230_v29 }
 0x159   :  { %718 = vmatprep.mubr.bf16.mxu1 %v240_v38 }
 0x15a   :  { %719 = vmatmul.mubr.bf16.vlgmr.msra.gmra.mrb[0].mxu1 %v241_v39 }
 0x22d   :  { %v720_v47 = vpop.f32.mrb[0].mxu1 }
 0x22e   :  { %v346_v49 = vpop.f32.mrb[1].mxu1  ;;  %v355_v51 = vadd.f32 %v720_v47, %v613_v48 }
 0x22f   :  { %v721_v50 = vpop.f32.mrb[2].mxu1  ;;  %v347_v54 = vadd.f32 %v613_v48, %v346_v49  ;;  %v631_v49 = vld [vmem:[%s1081_s7] ss:$0 sm:$0xff]  ;;  %s879_s7 = scalar_lea.vmem %s589_s25, 256 }
 0x230   :  { %v358_v52 = vadd.f32 %v721_v50, %v613_v48  ;;  %v349_v53 = vpop.f32.mrb[3].mxu1  ;;  %p880_p4 = scmp.ne.s32.totalorder %s589_s25, %s879_s7  ;;  %p885_p6 = scmp.lt.s32.totalorder %s879_s7, %s879_s7 }
 0x231   :  { %v350_v55 = vadd.f32 %v613_v48, %v349_v53 }
 0x232   :  { %v362_v56 = vpack.c.bf16 %v358_v52, %v355_v51  ;;  %p886_p7 = por %p885_p6, %p884_p5 }
 0x233   :  { %v361_v57 = vpack.c.bf16 %v350_v55, %v347_v54  ;;  %v632_v54 = vld [vmem:[%s1082_s8] ss:$0 sm:$0xff] }
 0x234   :  { %v364_v58 = vmul.bf16 1056980736, %v362_v56  ;;  %p887_p8 = pnand %p886_p7, %p880_p4 }
 0x235   :  { %v363_v59 = vmul.bf16 1056980736, %v361_v57 }
 0x236   :  { %779 = vtanh.bf16 %v364_v58 }
 0x237   :  { %781 = vtanh.bf16 %v363_v59 }
 0x241   :  { %v780_v60 = vpop.eup %779 }
 0x242   :  { %v782_v61 = vpop.eup %781  ;;  %v368_v62 = vmul.bf16 1056980736, %v780_v60 }
 0x243   :  { %v367_v63 = vmul.bf16 1056980736, %v782_v61 }
 0x244   :  { %v370_v0 = vadd.bf16 1056980736, %v368_v62 }
 0x245   :  { %v369_v1 = vadd.bf16 1056980736, %v367_v63 }
 0x246   :  { %v372_v3 = vmul.bf16 %v370_v0, %v362_v56 }
 0x247   :  { %v371_v2 = vmul.bf16 %v369_v1, %v361_v57 }
 0x249   :  { %738 = vmatprep.mubr.bf16.mxu0 %v371_v2 }
 0x24a   :  { %739 = vmatmul.mubr.bf16.vlgmr.msra.gmra.mrb[4].mxu0 %v372_v3 }
 0x31d   :  { %v740_v5 = vpop.f32.mrb[4].mxu0 }
 0x31e   :  { %v486_v6 = vadd.f32 %v740_v5, %v622_v4  ;;  %v477_v7 = vpop.f32.mrb[5].mxu0 }
 0x31f   :  { %v478_v8 = vadd.f32 %v622_v4, %v477_v7  ;;  %v741_v9 = vpop.f32.mrb[6].mxu0 }
 0x320   :  { %496 = vadd.xlane.f32.xlu1 %v486_v6  ;;  %v480_v10 = vpop.f32.mrb[7].mxu0  ;;  %v489_v11 = vadd.f32 %v741_v9, %v622_v4 }
 0x321   :  { %492 = vadd.xlane.f32.xlu0 %v478_v8  ;;  %v481_v12 = vadd.f32 %v622_v4, %v480_v10 }
 0x324   :  { %498 = vadd.xlane.f32.xlu1 %v489_v11 }
 0x325   :  { %494 = vadd.xlane.f32.xlu0 %v481_v12 }
 0x3ad   :  { %v497_v15 = vpop.xlane.xlu1 %496 }
 0x3ae   :  { %v502_v16 = vmul.f32 0.03125, %v497_v15  ;;  %v493_v17 = vpop.xlane.xlu0 %492 }
 0x3af   :  { %v500_v18 = vmul.f32 0.03125, %v493_v17 }
 0x3b0   :  { %v509_v19 = vsub.f32 %v486_v6, %v502_v16 }
 0x3b1   :  { %v507_v20 = vsub.f32 %v478_v8, %v500_v18  ;;  %v499_v21 = vpop.xlane.xlu1 %498 }
 0x3b2   :  { %v503_v22 = vmul.f32 0.03125, %v499_v21  ;;  %v495_v23 = vpop.xlane.xlu0 %494  ;;  %v513_v29 = vsel %vm506_vm0, %v509_v19, 0.0 }
 0x3b3   :  { %v501_v24 = vmul.f32 0.03125, %v495_v23  ;;  %v511_v25 = vsel %vm506_vm0, %v507_v20, 0.0  ;;  %v517_v31 = vmul.f32 %v513_v29, %v513_v29 }
 0x3b4   :  { %v515_v26 = vmul.f32 %v511_v25, %v511_v25  ;;  %v510_v27 = vsub.f32 %v489_v11, %v503_v22 }
 0x3b5   :  { %v508_v28 = vsub.f32 %v481_v12, %v501_v24 }
 0x3b6   :  { %519 = vadd.xlane.f32.xlu0 %v515_v26  ;;  %v514_v33 = vsel %vm506_vm0, %v510_v27, 0.0 }
 0x3b7   :  { %v512_v30 = vsel %vm506_vm0, %v508_v28, 0.0  ;;  %v518_v34 = vmul.f32 %v514_v33, %v514_v33 }
 0x3b8   :  { %v516_v32 = vmul.f32 %v512_v30, %v512_v30 }
 0x3ba   :  { %523 = vadd.xlane.f32.xlu0 %v517_v31  ;;  %521 = vadd.xlane.f32.xlu1 %v516_v32 }
 0x3be   :  { %525 = vadd.xlane.f32.xlu1 %v518_v34 }
 0x443   :  { %v520_v35 = vpop.xlane.xlu0 %519 }
 0x444   :  { %v527_v36 = vmul.f32 0.03125, %v520_v35 }
 0x446   :  { %v531_v37 = vadd.f32 1e-05, %v527_v36 }
 0x447   :  { %v522_v38 = vpop.xlane.xlu1 %521  ;;  %v524_v39 = vpop.xlane.xlu0 %523 }
 0x448   :  { %783 = vrsqrt.f32 %v531_v37  ;;  %v528_v40 = vmul.f32 0.03125, %v522_v38  ;;  %v529_v41 = vmul.f32 0.03125, %v524_v39 }
 0x44a   :  { %v532_v42 = vadd.f32 1e-05, %v528_v40  ;;  %v533_v43 = vadd.f32 1e-05, %v529_v41 }
 0x44b   :  { %v526_v44 = vpop.xlane.xlu1 %525 }
 0x44c   :  { %785 = vrsqrt.f32 %v532_v42  ;;  %v530_v45 = vmul.f32 0.03125, %v526_v44 }
 0x44d   :  { %787 = vrsqrt.f32 %v533_v43 }
 0x44e   :  { %v534_v46 = vadd.f32 1e-05, %v530_v45 }
 0x450   :  { %789 = vrsqrt.f32 %v534_v46 }
 0x452   :  { %v784_v47 = vpop.eup %783 }
 0x453   :  { %v539_v48 = vmul.f32 %v784_v47, %v511_v25 }
 0x455   :  { %v549_v53 = vmul.f32 %v631_v49, %v539_v48 }
 0x456   :  { %v786_v50 = vpop.eup %785 }
 0x457   :  { %v788_v51 = vpop.eup %787  ;;  %v540_v52 = vmul.f32 %v786_v50, %v512_v30  ;;  %v559_v60 = vadd.f32 %v632_v54, %v549_v53 }
 0x458   :  { %v541_v55 = vmul.f32 %v788_v51, %v513_v29 }
 0x459   :  { %v550_v56 = vmul.f32 %v631_v49, %v540_v52 }
 0x45a   :  { %v790_v57 = vpop.eup %789  ;;  %v551_v59 = vmul.f32 %v631_v49, %v541_v55 }
 0x45b   :  { %v542_v58 = vmul.f32 %v790_v57, %v514_v33  ;;  %v560_v61 = vadd.f32 %v632_v54, %v550_v56 }
 0x45c   :  { %v561_v0 = vadd.f32 %v632_v54, %v551_v59 }
 0x45d   :  { %v552_v62 = vmul.f32 %v631_v49, %v542_v58  ;;  %v644_v63 = vpack.c.bf16 %v560_v61, %v559_v60 }
 0x45f   :  { %v562_v1 = vadd.f32 %v632_v54, %v552_v62  ;;  %645 = vst [vmem:[#allocation10] sm:$0xff] %v644_v63  }
 0x461   :  { %v649_v2 = vpack.c.bf16 %v562_v1, %v561_v0 }
 0x463   :  { %651 = vst [vmem:[#allocation10 + $0x8] sm:$0xff] %v649_v2  }
 0x464   :  { %890 = shalt.err (!%p887_p8)
}
 0x465   :  { %s891_s0 = scalar_lea.hbm %s1083_s9, 256 }
 0x466   :  { %p892_p9 = scmp.ne.s32.totalorder %s1083_s9, %s891_s0  ;;  %p895_p10 = scmp.lt.u32.totalorder %s891_s0, %s1083_s9 }
 0x468   :  { %p897_p11 = pnand %p895_p10, %p892_p9 }
 0x46a   :  { %900 = shalt.err (!%p897_p11)
}
 0x46b   :  { %594 = dma.vmem_to_hbm [thread:$0]  %s589_s25, 256, %s1083_s9, [#allocation4], %s911_s21, %s911_s21, %s912_s22  }
 0x46c   :  { %907 = dma.done.wait [#allocation4], 256  }
 0x46d   :  { %908 = vsyncadd [#allocation4], 4294967040 }
 0x46e   :  { %598 = vsyncpa [#allocation3], 1 }
 0x46f   :  { %599 = vsyncpa [#allocation6], 1 }
 0x470   :  { %600 = vsyncpa [#allocation9], 1 }
 0x471   :  { %601 = vsyncpa [#allocation4], 1 }

</bundles_post_ra>
